<compile_context>
chip_gen: v5e
topology: v5e:2x2
jax: 0.10.0
libtpu: 0.0.40
codegen_flags: <defaults>
</compile_context>

<pallas_src>
import functools

import jax
import jax.numpy as jnp
from jax import lax
from jax.experimental import pallas as pl
from jax.experimental.pallas import tpu as pltpu


def _round_up(x, m):
    return ((x + m - 1) // m) * m


def _pick_row_tile(rows, max_tile):
    """Largest power-of-two-ish tile (multiple of 256, <= max_tile) that keeps
    at least 2 grid steps when there are enough rows (v7x has 2 TensorCores)."""
    max_tile = max(256, _round_up(max_tile, 256))
    tile = 256
    while tile * 2 <= max_tile and rows > tile * 2:
        tile *= 2
    return tile


def _carry_dtype_for_device():
    """bf16 inter-layer carry only where the VPU has native bf16 (v6e/v7x)."""
    try:
        kind = jax.devices()[0].device_kind.lower()
    except Exception:
        return jnp.float32
    if "v6" in kind or "v7" in kind or "trillium" in kind:
        return jnp.bfloat16
    return jnp.float32  # v5e / v4: no bf16 VPU -> keep elementwise in f32


# ----------------------------- Pallas kernel ------------------------------ #
def stid_kernel(xin_ref,          # (TR, Kp)      bf16  [ts | aux | 1 | 0-pad]
                win_ref,          # (Kp, Hp)      bf16  block weight (+bias row)
                w1_ref, w2_ref,   # (L, Hp, Hp)   bf16  encoder (+bias rows)
                wrt_ref,          # (OUTs, Hp)    bf16  regression^T (+bias col)
                out_ref,          # (OUTs, TR)    f32   transposed, lane-dense
                *, carry_dtype):
    mm = win_ref.dtype  # bf16 matmul operand dtype

    # Fused "time-series embedding + identity concat + bias":
    # win = [[w_ts, 0, 0], [0, I_aux, 0], [b_ts, 0, 1]], so the constant-1 lane
    # of xin produces the bias and a propagated ones-lane at hidden index H.
    h = jnp.dot(xin_ref[...], win_ref[...], preferred_element_type=jnp.float32)
    h = h.astype(carry_dtype)

    # Residual MLP encoder (static unroll).  Matmul inputs bf16, accumulation
    # f32; biases ride on the ones-lane so there are no broadcast adds.
    num_layers = w1_ref.shape[0]
    for layer in range(num_layers):
        h1 = jnp.dot(h.astype(mm), w1_ref[layer],
                     preferred_element_type=jnp.float32)
        h1 = jnp.maximum(h1, 0.0)  # ReLU
        # TODO(synk): dropout between ReLU and fc2 is identity at inference.
        h2 = jnp.dot(h1.astype(mm), w2_ref[layer],
                     preferred_element_type=jnp.float32)
        h = (h.astype(jnp.float32) + h2).astype(carry_dtype)

    # Regression layer, emitted transposed (OUTs, rows): contract the feature
    # axes of w_reg^T and h directly (no explicit transpose of h), so the HBM
    # store is lane-dense across rows with no 128-lane padding.
    out_t = lax.dot_general(wrt_ref[...], h.astype(mm),
                            dimension_numbers=(((1,), (1,)), ((), ())),
                            preferred_element_type=jnp.float32)
    out_ref[...] = out_t.astype(out_ref.dtype)


# ------------------------------ JAX wrapper -------------------------------- #
def stid_forward(x, params, *, input_dim, time_of_day_size, row_tile=2048):
    """x: (B, T, N, C_in)  ->  out: (B, output_length, N, 1)  (PyTorch NCHW)."""
    B, T, N, _ = x.shape

    # ---- glue (reshape / gather) in plain JAX, data path cast to bf16 early #
    input_data = x[..., :input_dim].astype(jnp.bfloat16)
    x_flat = jnp.transpose(input_data, (0, 2, 1, 3)).reshape(B, N, T * input_dim)

    # temporal identity embeddings, gathered at the *last* time step.
    # NOTE: indices are clamped (PyTorch STID would index OOB at tod frac == 1).
    tid_idx = jnp.clip((x[:, -1, :, 1] * time_of_day_size).astype(jnp.int32),
                       0, params["time_in_day_emb"].shape[0] - 1)      # (B, N)
    diw_idx = jnp.clip(x[:, -1, :, 2].astype(jnp.int32),
                       0, params["day_in_week_emb"].shape[0] - 1)      # (B, N)
    tid_emb = params["time_in_day_emb"].astype(jnp.bfloat16)[tid_idx]
    diw_emb = params["day_in_week_emb"].astype(jnp.bfloat16)[diw_idx]
    node_emb = jnp.broadcast_to(params["node_emb"].astype(jnp.bfloat16)[None],
                                (B, N, params["node_emb"].shape[-1]))
    aux = jnp.concatenate([node_emb, tid_emb, diw_emb], axis=-1)       # (B,N,AUX)

    # ---- sizes / padding --------------------------------------------------- #
    rows = B * N
    TC = T * input_dim
    AUX = aux.shape[-1]
    E = params["w_ts"].shape[-1]
    H = E + AUX                      # hidden_dim
    L = params["w1"].shape[0]
    OUT = params["w_reg"].shape[-1]

    K = TC + AUX                     # real features; lane K carries the 1s
    Kp = _round_up(K + 1, 128)
    Hp = _round_up(H + 1, 128)       # hidden lane H carries the propagated 1s
    OUTs = _round_up(OUT, 8)         # f32 min sublane tile for the output

    tile = _pick_row_tile(rows, row_tile)
    rows_pad = _round_up(rows, tile)

    # single bf16 materialization of the per-row input [ts | aux | 1 | 0-pad]
    xcat = jnp.concatenate(
        [x_flat.reshape(rows, TC),
         aux.reshape(rows, AUX),
         jnp.ones((rows, 1), jnp.bfloat16)], axis=-1)                  # (rows, K+1)
    xin = jnp.pad(xcat, ((0, rows_pad - rows), (0, Kp - (K + 1))))

    # ---- weights: all biases folded via the ones lane, cast to bf16 -------- #
    w_in = jnp.zeros((Kp, Hp), jnp.float32)
    w_in = w_in.at[:TC, :E].set(params["w_ts"])
    w_in = w_in.at[TC:K, E:H].set(jnp.eye(AUX, dtype=jnp.float32))
    w_in = w_in.at[K, :E].set(params["b_ts"][0])
    w_in = w_in.at[K, H].set(1.0)                     # create ones-lane at H

    w1 = jnp.zeros((L, Hp, Hp), jnp.float32)
    w1 = w1.at[:, :H, :H].set(params["w1"])
    w1 = w1.at[:, H, :H].set(params["b1"][:, 0, :])   # fc1 bias
    w1 = w1.at[:, H, H].set(1.0)                      # keep ones-lane alive
    w2 = jnp.zeros((L, Hp, Hp), jnp.float32)
    w2 = w2.at[:, :H, :H].set(params["w2"])
    w2 = w2.at[:, H, :H].set(params["b2"][:, 0, :])   # fc2 bias (col H stays 0)

    wr_t = jnp.zeros((OUTs, Hp), jnp.float32)
    wr_t = wr_t.at[:OUT, :H].set(params["w_reg"].T)
    wr_t = wr_t.at[:OUT, H].set(params["b_reg"][0])   # regression bias

    w_in, w1, w2, wr_t = (a.astype(jnp.bfloat16) for a in (w_in, w1, w2, wr_t))

    carry_dtype = _carry_dtype_for_device()
    kernel = functools.partial(stid_kernel, carry_dtype=carry_dtype)

    grid = (rows_pad // tile,)
    out_t = pl.pallas_call(
        kernel,
        out_shape=jax.ShapeDtypeStruct((OUTs, rows_pad), jnp.float32),
        grid=grid,
        in_specs=[
            pl.BlockSpec((tile, Kp), lambda i: (i, 0)),
            # weights/biases: grid-invariant (constant index maps), resident.
            pl.BlockSpec((Kp, Hp), lambda i: (0, 0)),
            pl.BlockSpec((L, Hp, Hp), lambda i: (0, 0, 0)),
            pl.BlockSpec((L, Hp, Hp), lambda i: (0, 0, 0)),
            pl.BlockSpec((OUTs, Hp), lambda i: (0, 0)),
        ],
        out_specs=pl.BlockSpec((OUTs, tile), lambda i: (0, i)),
        compiler_params=pltpu.CompilerParams(
            dimension_semantics=("parallel",)),
    )(xin, w_in, w1, w2, wr_t)

    # strip padding, back to PyTorch output layout: (B, output_length, N, 1)
    out = out_t[:OUT, :rows].reshape(OUT, B, N)
    return jnp.transpose(out, (1, 0, 2))[..., None]


# -------------------------- pure-JAX reference ----------------------------- #
def stid_reference(x, params, *, input_dim, time_of_day_size):
    B, T, N, _ = x.shape
    input_data = x[..., :input_dim]
    x_flat = jnp.transpose(input_data, (0, 2, 1, 3)).reshape(B, N, T * input_dim)
    tid_idx = jnp.clip((x[:, -1, :, 1] * time_of_day_size).astype(jnp.int32),
                       0, params["time_in_day_emb"].shape[0] - 1)
    diw_idx = jnp.clip(x[:, -1, :, 2].astype(jnp.int32),
                       0, params["day_in_week_emb"].shape[0] - 1)
    tid_emb = params["time_in_day_emb"][tid_idx]
    diw_emb = params["day_in_week_emb"][diw_idx]
    node_emb = jnp.broadcast_to(params["node_emb"][None, :, :],
                                (B, N, params["node_emb"].shape[-1]))
    ts_emb = x_flat @ params["w_ts"] + params["b_ts"]
    h = jnp.concatenate([ts_emb, node_emb, tid_emb, diw_emb], axis=-1)
    for l in range(params["w1"].shape[0]):
        h1 = jnp.maximum(h @ params["w1"][l] + params["b1"][l], 0.0)
        h = h + (h1 @ params["w2"][l] + params["b2"][l])
    out = h @ params["w_reg"] + params["b_reg"]
    return jnp.transpose(out, (0, 2, 1))[..., None]


# ------------------------------ param init --------------------------------- #
def xavier_uniform(key, shape):
    fan_in, fan_out = shape[-2], shape[-1]
    limit = (6.0 / (fan_in + fan_out)) ** 0.5
    return jax.random.uniform(key, shape, jnp.float32, -limit, limit)


def init_params(key, *, num_nodes, node_dim, input_length, input_dim,
                embed_dim, output_length, num_layer, temp_dim_tid,
                temp_dim_diw, time_of_day_size, day_of_week_size):
    hidden_dim = embed_dim + node_dim + temp_dim_tid + temp_dim_diw
    ks = jax.random.split(key, 12)
    # 1x1 conv weights stored directly as (in, out) matmul matrices.
    return {
        "node_emb": xavier_uniform(ks[0], (num_nodes, node_dim)),
        "time_in_day_emb": xavier_uniform(ks[1], (time_of_day_size, temp_dim_tid)),
        "day_in_week_emb": xavier_uniform(ks[2], (day_of_week_size, temp_dim_diw)),
        "w_ts": xavier_uniform(ks[3], (input_dim * input_length, embed_dim)),
        "b_ts": 0.01 * jax.random.normal(ks[4], (1, embed_dim), jnp.float32),
        "w1": xavier_uniform(ks[5], (num_layer, hidden_dim, hidden_dim)),
        "b1": 0.01 * jax.random.normal(ks[6], (num_layer, 1, hidden_dim), jnp.float32),
        "w2": xavier_uniform(ks[7], (num_layer, hidden_dim, hidden_dim)),
        "b2": 0.01 * jax.random.normal(ks[8], (num_layer, 1, hidden_dim), jnp.float32),
        "w_reg": xavier_uniform(ks[9], (hidden_dim, output_length)),
        "b_reg": 0.01 * jax.random.normal(ks[10], (1, output_length), jnp.float32),
    }


# --------------------------------- main ------------------------------------ #
if __name__ == "__main__":
    # small, module-consistent config
    B = 2
    num_nodes = 16
    input_length = 8
    input_dim = 3            # ch 0: data, ch 1: time-of-day frac, ch 2: day-of-week
    embed_dim = 32
    node_dim = 16
    temp_dim_tid = 16
    temp_dim_diw = 16
    output_length = 8
    num_layer = 2
    time_of_day_size = 48
    day_of_week_size = 7

    key = jax.random.PRNGKey(0)
    kx, kt, kd, kp = jax.random.split(key, 4)

    # input x: (B, T, N, C_in)
    data_ch = jax.random.normal(kx, (B, input_length, num_nodes, 1), jnp.float32)
    tod_ch = jax.random.uniform(kt, (B, input_length, num_nodes, 1), jnp.float32,
                                0.0, 0.999)                       # fraction of day
    dow_ch = jax.random.randint(kd, (B, input_length, num_nodes, 1), 0,
                                day_of_week_size).astype(jnp.float32)
    x = jnp.concatenate([data_ch, tod_ch, dow_ch], axis=-1)

    params = init_params(
        kp, num_nodes=num_nodes, node_dim=node_dim, input_length=input_length,
        input_dim=input_dim, embed_dim=embed_dim, output_length=output_length,
        num_layer=num_layer, temp_dim_tid=temp_dim_tid, temp_dim_diw=temp_dim_diw,
        time_of_day_size=time_of_day_size, day_of_week_size=day_of_week_size)

    fwd = jax.jit(functools.partial(stid_forward, input_dim=input_dim,
                                    time_of_day_size=time_of_day_size,
                                    row_tile=2048))
    out = jax.block_until_ready(fwd(x, params))
    assert out.shape == (B, output_length, num_nodes, 1), out.shape

    ref = jax.block_until_ready(
        stid_reference(x, params, input_dim=input_dim,
                       time_of_day_size=time_of_day_size))
    # bf16 matmul inputs / folded bf16 biases (+ bf16 carry on v6e/v7x) with
    # f32 accumulation -> looser tolerance vs the f32 reference.
    assert jnp.allclose(out, ref, atol=8e-2, rtol=8e-2), (
        "mismatch vs reference, max abs diff = %f"
        % float(jnp.max(jnp.abs(out - ref))))

    print("KERNEL_OK")
</pallas_src>

<mosaic_0001>
module attributes {stable_mosaic.version = 11 : i64} {
  func.func @stid_kernel(%arg0: i32, %arg1: memref<256x128xbf16, #tpu.memory_space<vmem>>, %arg2: memref<128x128xbf16, #tpu.memory_space<vmem>>, %arg3: memref<2x128x128xbf16, #tpu.memory_space<vmem>>, %arg4: memref<2x128x128xbf16, #tpu.memory_space<vmem>>, %arg5: memref<8x128xbf16, #tpu.memory_space<vmem>>, %arg6: memref<8x256xf32, #tpu.memory_space<vmem>>) attributes {dimension_semantics = [#tpu.dimension_semantics<parallel>], iteration_bounds = array<i64: 1>, scalar_prefetch = 0 : i64, scratch_operands = 0 : i64, tpu.core_type = #tpu.core_type<tc>, window_params = [{transform_indices = @transform_0, window_bounds = array<i64: 256, 128>}, {pipeline_mode = #tpu.pipeline_mode<synchronous>, transform_indices = @transform_1, window_bounds = array<i64: 128, 128>}, {pipeline_mode = #tpu.pipeline_mode<synchronous>, transform_indices = @transform_2, window_bounds = array<i64: 2, 128, 128>}, {pipeline_mode = #tpu.pipeline_mode<synchronous>, transform_indices = @transform_3, window_bounds = array<i64: 2, 128, 128>}, {pipeline_mode = #tpu.pipeline_mode<synchronous>, transform_indices = @transform_4, window_bounds = array<i64: 8, 128>}, {transform_indices = @transform_5, window_bounds = array<i64: 8, 256>}]} {
    %c0 = arith.constant 0 : index
    %c0_0 = arith.constant 0 : index
    %0 = vector.load %arg1[%c0, %c0_0] : memref<256x128xbf16, #tpu.memory_space<vmem>>, vector<256x128xbf16>
    %c0_1 = arith.constant 0 : index
    %c0_2 = arith.constant 0 : index
    %1 = vector.load %arg2[%c0_1, %c0_2] : memref<128x128xbf16, #tpu.memory_space<vmem>>, vector<128x128xbf16>
    %cst = arith.constant dense<0.000000e+00> : vector<256x128xf32>
    %2 = tpu.matmul %0, %1, %cst {dimension_numbers = #tpu.dot_dimension_numbers<[1], [0], [0], [1], [0, 0, 1, 1], [], []>} : vector<256x128xbf16>, vector<128x128xbf16>, vector<256x128xf32> -> vector<256x128xf32>
    %3 = arith.truncf %2 : vector<256x128xf32> to vector<256x128xbf16>
    %c0_3 = arith.constant 0 : index
    %c0_4 = arith.constant 0 : index
    %c0_5 = arith.constant 0 : index
    %4 = vector.load %arg3[%c0_3, %c0_4, %c0_5] : memref<2x128x128xbf16, #tpu.memory_space<vmem>>, vector<1x128x128xbf16>
    %5 = vector.shape_cast %4 : vector<1x128x128xbf16> to vector<128x128xbf16>
    %cst_6 = arith.constant dense<0.000000e+00> : vector<256x128xf32>
    %6 = tpu.matmul %3, %5, %cst_6 {dimension_numbers = #tpu.dot_dimension_numbers<[1], [0], [0], [1], [0, 0, 1, 1], [], []>} : vector<256x128xbf16>, vector<128x128xbf16>, vector<256x128xf32> -> vector<256x128xf32>
    %cst_7 = arith.constant 0.000000e+00 : f32
    %7 = vector.broadcast %cst_7 : f32 to vector<256x128xf32>
    %8 = arith.maximumf %6, %7 : vector<256x128xf32>
    %9 = arith.truncf %8 : vector<256x128xf32> to vector<256x128xbf16>
    %c0_8 = arith.constant 0 : index
    %c0_9 = arith.constant 0 : index
    %c0_10 = arith.constant 0 : index
    %10 = vector.load %arg4[%c0_8, %c0_9, %c0_10] : memref<2x128x128xbf16, #tpu.memory_space<vmem>>, vector<1x128x128xbf16>
    %11 = vector.shape_cast %10 : vector<1x128x128xbf16> to vector<128x128xbf16>
    %cst_11 = arith.constant dense<0.000000e+00> : vector<256x128xf32>
    %12 = tpu.matmul %9, %11, %cst_11 {dimension_numbers = #tpu.dot_dimension_numbers<[1], [0], [0], [1], [0, 0, 1, 1], [], []>} : vector<256x128xbf16>, vector<128x128xbf16>, vector<256x128xf32> -> vector<256x128xf32>
    %13 = arith.addf %2, %12 : vector<256x128xf32>
    %14 = arith.truncf %13 : vector<256x128xf32> to vector<256x128xbf16>
    %c1 = arith.constant 1 : index
    %c0_12 = arith.constant 0 : index
    %c0_13 = arith.constant 0 : index
    %15 = vector.load %arg3[%c1, %c0_12, %c0_13] : memref<2x128x128xbf16, #tpu.memory_space<vmem>>, vector<1x128x128xbf16>
    %16 = vector.shape_cast %15 : vector<1x128x128xbf16> to vector<128x128xbf16>
    %cst_14 = arith.constant dense<0.000000e+00> : vector<256x128xf32>
    %17 = tpu.matmul %14, %16, %cst_14 {dimension_numbers = #tpu.dot_dimension_numbers<[1], [0], [0], [1], [0, 0, 1, 1], [], []>} : vector<256x128xbf16>, vector<128x128xbf16>, vector<256x128xf32> -> vector<256x128xf32>
    %cst_15 = arith.constant 0.000000e+00 : f32
    %18 = vector.broadcast %cst_15 : f32 to vector<256x128xf32>
    %19 = arith.maximumf %17, %18 : vector<256x128xf32>
    %20 = arith.truncf %19 : vector<256x128xf32> to vector<256x128xbf16>
    %c1_16 = arith.constant 1 : index
    %c0_17 = arith.constant 0 : index
    %c0_18 = arith.constant 0 : index
    %21 = vector.load %arg4[%c1_16, %c0_17, %c0_18] : memref<2x128x128xbf16, #tpu.memory_space<vmem>>, vector<1x128x128xbf16>
    %22 = vector.shape_cast %21 : vector<1x128x128xbf16> to vector<128x128xbf16>
    %cst_19 = arith.constant dense<0.000000e+00> : vector<256x128xf32>
    %23 = tpu.matmul %20, %22, %cst_19 {dimension_numbers = #tpu.dot_dimension_numbers<[1], [0], [0], [1], [0, 0, 1, 1], [], []>} : vector<256x128xbf16>, vector<128x128xbf16>, vector<256x128xf32> -> vector<256x128xf32>
    %24 = arith.addf %13, %23 : vector<256x128xf32>
    %c0_20 = arith.constant 0 : index
    %c0_21 = arith.constant 0 : index
    %25 = vector.load %arg5[%c0_20, %c0_21] : memref<8x128xbf16, #tpu.memory_space<vmem>>, vector<8x128xbf16>
    %26 = arith.truncf %24 : vector<256x128xf32> to vector<256x128xbf16>
    %cst_22 = arith.constant dense<0.000000e+00> : vector<8x256xf32>
    %27 = tpu.matmul %25, %26, %cst_22 {dimension_numbers = #tpu.dot_dimension_numbers<[1], [1], [0], [0], [0, 0, 1, 0], [], []>} : vector<8x128xbf16>, vector<256x128xbf16>, vector<8x256xf32> -> vector<8x256xf32>
    %c0_23 = arith.constant 0 : index
    %c0_24 = arith.constant 0 : index
    %28 = vector.load %arg6[%c0_23, %c0_24] : memref<8x256xf32, #tpu.memory_space<vmem>>, vector<8x256xf32>
    tpu.vector_store %arg6[%c0_23, %c0_24], %27 {strides = array<i32>} : memref<8x256xf32, #tpu.memory_space<vmem>>, vector<8x256xf32>,
    return
  }
  func.func @transform_0(%arg0: i32) -> (i32, i32) {
    %c0_i32 = arith.constant 0 : i32
    %c0_i32_0 = arith.constant 0 : i32
    return %arg0, %c0_i32 : i32, i32
  }
  func.func @transform_1(%arg0: i32) -> (i32, i32) {
    %c0_i32 = arith.constant 0 : i32
    %c0_i32_0 = arith.constant 0 : i32
    %c0_i32_1 = arith.constant 0 : i32
    return %c0_i32, %c0_i32_0 : i32, i32
  }
  func.func @transform_2(%arg0: i32) -> (i32, i32, i32) {
    %c0_i32 = arith.constant 0 : i32
    %c0_i32_0 = arith.constant 0 : i32
    %c0_i32_1 = arith.constant 0 : i32
    %c0_i32_2 = arith.constant 0 : i32
    return %c0_i32, %c0_i32_0, %c0_i32_1 : i32, i32, i32
  }
  func.func @transform_3(%arg0: i32) -> (i32, i32, i32) {
    %c0_i32 = arith.constant 0 : i32
    %c0_i32_0 = arith.constant 0 : i32
    %c0_i32_1 = arith.constant 0 : i32
    %c0_i32_2 = arith.constant 0 : i32
    return %c0_i32, %c0_i32_0, %c0_i32_1 : i32, i32, i32
  }
  func.func @transform_4(%arg0: i32) -> (i32, i32) {
    %c0_i32 = arith.constant 0 : i32
    %c0_i32_0 = arith.constant 0 : i32
    %c0_i32_1 = arith.constant 0 : i32
    return %c0_i32, %c0_i32_0 : i32, i32
  }
  func.func @transform_5(%arg0: i32) -> (i32, i32) {
    %c0_i32 = arith.constant 0 : i32
    %c0_i32_0 = arith.constant 0 : i32
    return %c0_i32, %arg0 : i32, i32
  }
}

</mosaic_0001>

<bundles_post_ra>
// kernel: stid_forward.1
= control target key start
LH: loop header
LB: loop body
LE: loop exit
PB: predicated region body
PF: predicated region fallthrough
CT: control target
= control target key end

     0   :  { %s1982_s1 = inlined_call_operand.vmem [shape: bf16[128,128], index: 1, kind: input, shape index: {}]   ;;  %s1983_s0 = inlined_call_operand.vmem [shape: bf16[256,128], index: 0, kind: input, shape index: {}]   ;;  %s1984_s2 = inlined_call_operand.vmem [shape: bf16[2,128,128], index: 2, kind: input, shape index: {}]   ;;  %s1985_s3 = inlined_call_operand.vmem [shape: bf16[2,128,128], index: 3, kind: input, shape index: {}]   ;;  %s1986_s4 = inlined_call_operand.vmem [shape: bf16[8,128], index: 4, kind: input, shape index: {}]   ;;  %s1987_s5 = inlined_call_operand.vmem [shape: f32[8,256], index: 5, kind: output, shape index: {}]  }
   0x1   :  { %v1435_v0 = vld [vmem:[%s1982_s1 + $0x38] sm:$0xff]  ;;  %v1434_v1 = vld [vmem:[%s1982_s1 + $0x30] sm:$0xff]  ;;  %v1433_v2 = vld [vmem:[%s1982_s1 + $0x28] sm:$0xff] }
   0x2   :  { %212 = vmatpush.bf16.msra.mxu0 %v1435_v0  ;;  %1468 = vmatpush.bf16.msra.mxu1 %v1435_v0  ;;  %v1432_v3 = vld [vmem:[%s1982_s1 + $0x20] sm:$0xff]  ;;  %v1431_v4 = vld [vmem:[%s1982_s1 + $0x18] sm:$0xff]  ;;  %v1430_v5 = vld [vmem:[%s1982_s1 + $0x10] sm:$0xff] }
   0x3   :  { %1469 = vmatpush.bf16.msra.mxu2 %v1435_v0  ;;  %1470 = vmatpush.bf16.msra.mxu3 %v1435_v0  ;;  %v1429_v6 = vld [vmem:[%s1982_s1 + $0x8] sm:$0xff]  ;;  %v1428_v7 = vld [vmem:[%s1982_s1] sm:$0xff]  ;;  %v1414_v10 = vld [vmem:[%s1983_s0 + $0x10] sm:$0xff] }
   0x4   :  { %v1412_v8 = vld [vmem:[%s1983_s0] sm:$0xff]  ;;  %v1413_v9 = vld [vmem:[%s1983_s0 + $0x8] sm:$0xff]  ;;  %v1419_v12 = vld [vmem:[%s1983_s0 + $0x38] sm:$0xff] }
   0x5   :  { %v1417_v11 = vld [vmem:[%s1983_s0 + $0x28] sm:$0xff]  ;;  %v1443_v13 = vld [vmem:[%s1984_s2 + $0x38] sm:$0xff]  ;;  %v1442_v14 = vld [vmem:[%s1984_s2 + $0x30] sm:$0xff] }
   0x6   :  { %213 = vmatpush.bf16.msra.mxu0 %v1434_v1  ;;  %1471 = vmatpush.bf16.msra.mxu1 %v1434_v1  ;;  %v1441_v15 = vld [vmem:[%s1984_s2 + $0x28] sm:$0xff]  ;;  %v1440_v16 = vld [vmem:[%s1984_s2 + $0x20] sm:$0xff]  ;;  %v1415_v17 = vld [vmem:[%s1983_s0 + $0x18] sm:$0xff] }
   0x7   :  { %1472 = vmatpush.bf16.msra.mxu2 %v1434_v1  ;;  %1473 = vmatpush.bf16.msra.mxu3 %v1434_v1  ;;  %v1418_v18 = vld [vmem:[%s1983_s0 + $0x30] sm:$0xff]  ;;  %v1420_v19 = vld [vmem:[%s1983_s0 + $0x40] sm:$0xff]  ;;  %v1439_v20 = vld [vmem:[%s1984_s2 + $0x18] sm:$0xff] }
   0x8   :  { %v1416_v21 = vld [vmem:[%s1983_s0 + $0x20] sm:$0xff]  ;;  %v1438_v22 = vld [vmem:[%s1984_s2 + $0x10] sm:$0xff]  ;;  %v1437_v23 = vld [vmem:[%s1984_s2 + $0x8] sm:$0xff] }
   0x9   :  { %v1421_v24 = vld [vmem:[%s1983_s0 + $0x48] sm:$0xff]  ;;  %v1436_v25 = vld [vmem:[%s1984_s2] sm:$0xff]  ;;  %v1422_v26 = vld [vmem:[%s1983_s0 + $0x50] sm:$0xff] }
   0xa   :  { %214 = vmatpush.bf16.msra.mxu0 %v1433_v2  ;;  %1474 = vmatpush.bf16.msra.mxu1 %v1433_v2  ;;  %v1423_v28 = vld [vmem:[%s1983_s0 + $0x58] sm:$0xff]  ;;  %v1424_v32 = vld [vmem:[%s1983_s0 + $0x60] sm:$0xff]  ;;  %v1425_v36 = vld [vmem:[%s1983_s0 + $0x68] sm:$0xff] }
   0xb   :  { %1475 = vmatpush.bf16.msra.mxu2 %v1433_v2  ;;  %1476 = vmatpush.bf16.msra.mxu3 %v1433_v2  ;;  %v1426_v39 = vld [vmem:[%s1983_s0 + $0x70] sm:$0xff]  ;;  %v1427_v43 = vld [vmem:[%s1983_s0 + $0x78] sm:$0xff]  ;;  %v1449_v52 = vld [vmem:[%s1985_s3 + $0x28] sm:$0xff] }
   0xc   :  { %v1451_v48 = vld [vmem:[%s1985_s3 + $0x38] sm:$0xff]  ;;  %v1450_v49 = vld [vmem:[%s1985_s3 + $0x30] sm:$0xff]  ;;  %v1448_v54 = vld [vmem:[%s1985_s3 + $0x20] sm:$0xff] }
   0xd   :  { %v1447_v56 = vld [vmem:[%s1985_s3 + $0x18] sm:$0xff]  ;;  %v1446_v58 = vld [vmem:[%s1985_s3 + $0x10] sm:$0xff]  ;;  %v1445_v61 = vld [vmem:[%s1985_s3 + $0x8] sm:$0xff] }
   0xe   :  { %215 = vmatpush.bf16.msra.mxu0 %v1432_v3  ;;  %1477 = vmatpush.bf16.msra.mxu1 %v1432_v3  ;;  %v1444_v62 = vld [vmem:[%s1985_s3] sm:$0xff] }
   0xf   :  { %1478 = vmatpush.bf16.msra.mxu2 %v1432_v3  ;;  %1479 = vmatpush.bf16.msra.mxu3 %v1432_v3 }
  0x12   :  { %216 = vmatpush.bf16.msra.mxu0 %v1431_v4  ;;  %1480 = vmatpush.bf16.msra.mxu1 %v1431_v4 }
  0x13   :  { %1481 = vmatpush.bf16.msra.mxu2 %v1431_v4  ;;  %1482 = vmatpush.bf16.msra.mxu3 %v1431_v4 }
  0x16   :  { %217 = vmatpush.bf16.msra.mxu0 %v1430_v5  ;;  %1483 = vmatpush.bf16.msra.mxu1 %v1430_v5 }
  0x17   :  { %1484 = vmatpush.bf16.msra.mxu2 %v1430_v5  ;;  %1485 = vmatpush.bf16.msra.mxu3 %v1430_v5 }
  0x1a   :  { %218 = vmatpush.bf16.msra.mxu0 %v1429_v6  ;;  %1486 = vmatpush.bf16.msra.mxu1 %v1429_v6 }
  0x1b   :  { %1487 = vmatpush.bf16.msra.mxu2 %v1429_v6  ;;  %1488 = vmatpush.bf16.msra.mxu3 %v1429_v6 }
  0x1e   :  { %219 = vmatpush.bf16.msra.mxu0 %v1428_v7  ;;  %1489 = vmatpush.bf16.msra.mxu1 %v1428_v7 }
  0x1f   :  { %1490 = vmatpush.bf16.msra.mxu2 %v1428_v7  ;;  %1491 = vmatpush.bf16.msra.mxu3 %v1428_v7 }
  0x21   :  { %220 = vmatmul.bf16.vlgmr.msra.gmra.mxu0 %v1412_v8  ;;  %245 = vmatmul.bf16.vlgmr.msra.gmra.mxu1 %v1417_v11 }
  0x22   :  { %255 = vmatmul.bf16.vlgmr.msra.gmra.mxu2 %v1419_v12  ;;  %381 = vmatpush.bf16.msrb.mxu1 %v1443_v13 }
  0x23   :  { %275 = vmatmul.bf16.vlgmr.msra.gmra.mxu3 %v1423_v28  ;;  %582 = vmatpush.bf16.msrb.mxu2 %v1451_v48 }
  0x26   :  { %382 = vmatpush.bf16.msrb.mxu1 %v1442_v14 }
  0x27   :  { %583 = vmatpush.bf16.msrb.mxu2 %v1450_v49 }
  0x2a   :  { %383 = vmatpush.bf16.msrb.mxu1 %v1441_v15 }
  0x2b   :  { %584 = vmatpush.bf16.msrb.mxu2 %v1449_v52 }
  0x2e   :  { %384 = vmatpush.bf16.msrb.mxu1 %v1440_v16 }
  0x2f   :  { %585 = vmatpush.bf16.msrb.mxu2 %v1448_v54 }
  0x31   :  { %225 = vmatmul.bf16.gmra.mxu0 %v1413_v9  ;;  %250 = vmatmul.bf16.gmra.mxu1 %v1418_v18 }
  0x32   :  { %260 = vmatmul.bf16.gmra.mxu2 %v1420_v19  ;;  %385 = vmatpush.bf16.msrb.mxu1 %v1439_v20 }
  0x33   :  { %280 = vmatmul.bf16.gmra.mxu3 %v1424_v32  ;;  %586 = vmatpush.bf16.msrb.mxu2 %v1447_v56 }
  0x36   :  { %386 = vmatpush.bf16.msrb.mxu1 %v1438_v22 }
  0x37   :  { %587 = vmatpush.bf16.msrb.mxu2 %v1446_v58 }
  0x3a   :  { %387 = vmatpush.bf16.msrb.mxu1 %v1437_v23 }
  0x3b   :  { %588 = vmatpush.bf16.msrb.mxu2 %v1445_v61 }
  0x3e   :  { %388 = vmatpush.bf16.msrb.mxu1 %v1436_v25 }
  0x3f   :  { %589 = vmatpush.bf16.msrb.mxu2 %v1444_v62 }
  0x41   :  { %230 = vmatmul.bf16.gmra.mxu0 %v1414_v10 }
  0x42   :  { %265 = vmatmul.bf16.gmra.mxu2 %v1421_v24 }
  0x43   :  { %285 = vmatmul.bf16.gmra.mxu3 %v1425_v36 }
  0x51   :  { %235 = vmatmul.bf16.gmra.mxu0 %v1415_v17 }
  0x52   :  { %270 = vmatmul.bf16.gmra.mxu2 %v1422_v26 }
  0x53   :  { %290 = vmatmul.bf16.gmra.mxu3 %v1426_v39 }
  0x61   :  { %240 = vmatmul.bf16.gmra.mxu0 %v1416_v21 }
  0x63   :  { %295 = vmatmul.bf16.gmra.mxu3 %v1427_v43 }
  0x9e   :  { %v1603_v27 = vpop.f32.mrf.mxu0  ;;  %v1646_v46 = vpop.f32.mrf.mxu1 }
  0xa5   :  { %v1668_v55 = vpop.f32.mrf.mxu2 }
  0xa6   :  { %v1608_v29 = vpop.f32.mrf.mxu0  ;;  %v1656_v50 = vpop.f32.mrf.mxu1 }
  0xa7   :  { %v301_v30 = vpack.c.bf16 %v1608_v29, %v1603_v27  ;;  %v306_v51 = vpack.c.bf16 %v1656_v50, %v1646_v46  ;;  %v1704_v13 = vpop.f32.mrf.mxu3 }
  0xa9   :  { %389 = vmatmul.bf16.vlgmr.msrb.gmra.mxu1 %v301_v30 }
  0xad   :  { %v1680_v60 = vpop.f32.mrf.mxu2 }
  0xae   :  { %v1612_v31 = vpop.f32.mrf.mxu0  ;;  %v1663_v53 = vpop.f32.mrf.mxu1  ;;  %v308_v0 = vpack.c.bf16 %v1680_v60, %v1668_v55 }
  0xaf   :  { %v1708_v19 = vpop.f32.mrf.mxu3 }
  0xb0   :  { %v312_v30 = vpack.c.bf16 %v1708_v19, %v1704_v13 }
  0xb5   :  { %v1688_v63 = vpop.f32.mrf.mxu2 }
  0xb6   :  { %v1617_v33 = vpop.f32.mrf.mxu0  ;;  %v1673_v57 = vpop.f32.mrf.mxu1 }
  0xb7   :  { %v302_v34 = vpack.c.bf16 %v1617_v33, %v1612_v31  ;;  %v307_v59 = vpack.c.bf16 %v1673_v57, %v1663_v53  ;;  %v1712_v23 = vpop.f32.mrf.mxu3 }
  0xb9   :  { %394 = vmatmul.bf16.gmra.mxu1 %v302_v34 }
  0xbd   :  { %v1692_v1 = vpop.f32.mrf.mxu2 }
  0xbe   :  { %v1621_v35 = vpop.f32.mrf.mxu0  ;;  %v309_v4 = vpack.c.bf16 %v1692_v1, %v1688_v63 }
  0xbf   :  { %v1716_v32 = vpop.f32.mrf.mxu3 }
  0xc5   :  { %v1694_v2 = vpop.f32.mrf.mxu2 }
  0xc6   :  { %v1626_v37 = vpop.f32.mrf.mxu0 }
  0xc7   :  { %v303_v38 = vpack.c.bf16 %v1626_v37, %v1621_v35 }
  0xc9   :  { %399 = vmatmul.bf16.gmra.mxu1 %v303_v38 }
  0xcd   :  { %v1698_v8 = vpop.f32.mrf.mxu2 }
  0xce   :  { %v1633_v40 = vpop.f32.mrf.mxu0  ;;  %v310_v11 = vpack.c.bf16 %v1698_v8, %v1694_v2 }
  0xd5   :  { %v1702_v12 = vpop.f32.mrf.mxu2 }
  0xd6   :  { %v1635_v41 = vpop.f32.mrf.mxu0 }
  0xd7   :  { %v304_v42 = vpack.c.bf16 %v1635_v41, %v1633_v40 }
  0xd9   :  { %404 = vmatmul.bf16.gmra.mxu1 %v304_v42  ;;  %v1718_v42 = vpop.f32.mrf.mxu3 }
  0xdd   :  { %v1706_v18 = vpop.f32.mrf.mxu2 }
  0xde   :  { %v1642_v44 = vpop.f32.mrf.mxu0  ;;  %v311_v21 = vpack.c.bf16 %v1706_v18, %v1702_v12 }
  0xe1   :  { %v1722_v48 = vpop.f32.mrf.mxu3 }
  0xe6   :  { %v1644_v45 = vpop.f32.mrf.mxu0 }
  0xe7   :  { %v305_v47 = vpack.c.bf16 %v1644_v45, %v1642_v44 }
  0xe9   :  { %409 = vmatmul.bf16.gmra.mxu1 %v305_v47  ;;  %v313_v47 = vpack.c.bf16 %v1716_v32, %v1712_v23  ;;  %v1724_v56 = vpop.f32.mrf.mxu3 }
  0xf9   :  { %414 = vmatmul.bf16.gmra.mxu1 %v306_v51 }
 0x109   :  { %419 = vmatmul.bf16.gmra.mxu1 %v307_v59  ;;  %v314_v59 = vpack.c.bf16 %v1722_v48, %v1718_v42 }
 0x119   :  { %424 = vmatmul.bf16.gmra.mxu1 %v308_v0 }
 0x126   :  { %v390_v3 = vpop.f32.mrf.mxu1 }
 0x127   :  { %v470_v6 = vmax.f32 %v390_v3, 0.0  ;;  %v1728_v3 = vpop.f32.mrf.mxu3 }
 0x129   :  { %429 = vmatmul.bf16.gmra.mxu1 %v309_v4 }
 0x12e   :  { %v392_v5 = vpop.f32.mrf.mxu1 }
 0x12f   :  { %v471_v7 = vmax.f32 %v392_v5, 0.0  ;;  %v1459_v5 = vld [vmem:[%s1984_s2 + $0x78] sm:$0xff] }
 0x130   :  { %784 = vmatpush.bf16.msrb.mxu3 %v1459_v5 }
 0x131   :  { %v502_v9 = vpack.c.bf16 %v471_v7, %v470_v6  ;;  %v1458_v7 = vld [vmem:[%s1984_s2 + $0x70] sm:$0xff] }
 0x133   :  { %590 = vmatmul.bf16.vlgmr.msrb.gmra.mxu2 %v502_v9  ;;  %v315_v9 = vpack.c.bf16 %v1728_v3, %v1724_v56 }
 0x134   :  { %785 = vmatpush.bf16.msrb.mxu3 %v1458_v7 }
 0x136   :  { %v395_v10 = vpop.f32.mrf.mxu1 }
 0x137   :  { %v472_v15 = vmax.f32 %v395_v10, 0.0  ;;  %v1457_v10 = vld [vmem:[%s1984_s2 + $0x68] sm:$0xff] }
 0x138   :  { %786 = vmatpush.bf16.msrb.mxu3 %v1457_v10 }
 0x139   :  { %434 = vmatmul.bf16.gmra.mxu1 %v310_v11  ;;  %v1741_v11 = vpop.f32.mrf.mxu3 }
 0x13e   :  { %v397_v14 = vpop.f32.mrf.mxu1 }
 0x13f   :  { %v473_v16 = vmax.f32 %v397_v14, 0.0 }
 0x141   :  { %v503_v17 = vpack.c.bf16 %v473_v16, %v472_v15  ;;  %v1456_v15 = vld [vmem:[%s1984_s2 + $0x60] sm:$0xff] }
 0x142   :  { %787 = vmatpush.bf16.msrb.mxu3 %v1456_v15 }
 0x143   :  { %595 = vmatmul.bf16.gmra.mxu2 %v503_v17 }
 0x146   :  { %v400_v20 = vpop.f32.mrf.mxu1 }
 0x147   :  { %v474_v24 = vmax.f32 %v400_v20, 0.0 }
 0x149   :  { %439 = vmatmul.bf16.gmra.mxu1 %v311_v21  ;;  %v1455_v21 = vld [vmem:[%s1984_s2 + $0x58] sm:$0xff] }
 0x14a   :  { %788 = vmatpush.bf16.msrb.mxu3 %v1455_v21 }
 0x14e   :  { %v402_v22 = vpop.f32.mrf.mxu1 }
 0x14f   :  { %v475_v25 = vmax.f32 %v402_v22, 0.0  ;;  %v1749_v22 = vpop.f32.mrf.mxu3 }
 0x151   :  { %v504_v26 = vpack.c.bf16 %v475_v25, %v474_v24  ;;  %v1454_v25 = vld [vmem:[%s1984_s2 + $0x50] sm:$0xff] }
 0x152   :  { %789 = vmatpush.bf16.msrb.mxu3 %v1454_v25 }
 0x153   :  { %600 = vmatmul.bf16.gmra.mxu2 %v504_v26  ;;  %v316_v26 = vpack.c.bf16 %v1749_v22, %v1741_v11 }
 0x156   :  { %v405_v28 = vpop.f32.mrf.mxu1 }
 0x157   :  { %v476_v36 = vmax.f32 %v405_v28, 0.0  ;;  %v1453_v28 = vld [vmem:[%s1984_s2 + $0x48] sm:$0xff] }
 0x158   :  { %790 = vmatpush.bf16.msrb.mxu3 %v1453_v28 }
 0x159   :  { %444 = vmatmul.bf16.gmra.mxu1 %v312_v30 }
 0x15e   :  { %v407_v34 = vpop.f32.mrf.mxu1 }
 0x15f   :  { %v477_v38 = vmax.f32 %v407_v34, 0.0  ;;  %v1452_v34 = vld [vmem:[%s1984_s2 + $0x40] sm:$0xff] }
 0x160   :  { %791 = vmatpush.bf16.msrb.mxu3 %v1452_v34 }
 0x161   :  { %v505_v39 = vpack.c.bf16 %v477_v38, %v476_v36 }
 0x163   :  { %605 = vmatmul.bf16.gmra.mxu2 %v505_v39 }
 0x166   :  { %v410_v43 = vpop.f32.mrf.mxu1 }
 0x167   :  { %v478_v51 = vmax.f32 %v410_v43, 0.0 }
 0x169   :  { %449 = vmatmul.bf16.gmra.mxu1 %v313_v47 }
 0x16e   :  { %v412_v49 = vpop.f32.mrf.mxu1 }
 0x16f   :  { %v479_v52 = vmax.f32 %v412_v49, 0.0 }
 0x171   :  { %v506_v54 = vpack.c.bf16 %v479_v52, %v478_v51 }
 0x173   :  { %610 = vmatmul.bf16.gmra.mxu2 %v506_v54 }
 0x176   :  { %v415_v58 = vpop.f32.mrf.mxu1 }
 0x177   :  { %v480_v62 = vmax.f32 %v415_v58, 0.0 }
 0x179   :  { %454 = vmatmul.bf16.gmra.mxu1 %v314_v59 }
 0x17e   :  { %v417_v61 = vpop.f32.mrf.mxu1 }
 0x17f   :  { %v481_v0 = vmax.f32 %v417_v61, 0.0 }
 0x181   :  { %v507_v4 = vpack.c.bf16 %v481_v0, %v480_v62 }
 0x183   :  { %615 = vmatmul.bf16.gmra.mxu2 %v507_v4 }
 0x186   :  { %v420_v6 = vpop.f32.mrf.mxu1 }
 0x187   :  { %v482_v16 = vmax.f32 %v420_v6, 0.0 }
 0x189   :  { %459 = vmatmul.bf16.gmra.mxu1 %v315_v9 }
 0x18e   :  { %v422_v14 = vpop.f32.mrf.mxu1 }
 0x18f   :  { %v483_v17 = vmax.f32 %v422_v14, 0.0 }
 0x191   :  { %v508_v20 = vpack.c.bf16 %v483_v17, %v482_v16 }
 0x193   :  { %620 = vmatmul.bf16.gmra.mxu2 %v508_v20 }
 0x196   :  { %v425_v24 = vpop.f32.mrf.mxu1 }
 0x197   :  { %v484_v36 = vmax.f32 %v425_v24, 0.0 }
 0x199   :  { %464 = vmatmul.bf16.gmra.mxu1 %v316_v26 }
 0x19e   :  { %v427_v30 = vpop.f32.mrf.mxu1 }
 0x19f   :  { %v485_v38 = vmax.f32 %v427_v30, 0.0 }
 0x1a1   :  { %v509_v39 = vpack.c.bf16 %v485_v38, %v484_v36 }
 0x1a3   :  { %625 = vmatmul.bf16.gmra.mxu2 %v509_v39 }
 0x1a6   :  { %v430_v43 = vpop.f32.mrf.mxu1 }
 0x1a7   :  { %v486_v49 = vmax.f32 %v430_v43, 0.0 }
 0x1ae   :  { %v432_v47 = vpop.f32.mrf.mxu1 }
 0x1af   :  { %v487_v51 = vmax.f32 %v432_v47, 0.0 }
 0x1b1   :  { %v510_v52 = vpack.c.bf16 %v487_v51, %v486_v49 }
 0x1b3   :  { %630 = vmatmul.bf16.gmra.mxu2 %v510_v52 }
 0x1b6   :  { %v435_v54 = vpop.f32.mrf.mxu1  ;;  %v591_v58 = vpop.f32.mrf.mxu2 }
 0x1b7   :  { %v488_v62 = vmax.f32 %v435_v54, 0.0  ;;  %v1763_v0 = vadd.f32 %v591_v58, %v1603_v27 }
 0x1be   :  { %v437_v59 = vpop.f32.mrf.mxu1  ;;  %v593_v61 = vpop.f32.mrf.mxu2 }
 0x1bf   :  { %v489_v4 = vmax.f32 %v437_v59, 0.0  ;;  %v1766_v5 = vadd.f32 %v593_v61, %v1608_v29 }
 0x1c1   :  { %v511_v6 = vpack.c.bf16 %v489_v4, %v488_v62  ;;  %v703_v7 = vpack.c.bf16 %v1766_v5, %v1763_v0 }
 0x1c3   :  { %635 = vmatmul.bf16.gmra.mxu2 %v511_v6  ;;  %792 = vmatmul.bf16.vlgmr.msrb.gmra.mxu3 %v703_v7 }
 0x1c6   :  { %v440_v9 = vpop.f32.mrf.mxu1  ;;  %v596_v10 = vpop.f32.mrf.mxu2 }
 0x1c7   :  { %v490_v16 = vmax.f32 %v440_v9, 0.0  ;;  %v1771_v17 = vadd.f32 %v596_v10, %v1612_v31 }
 0x1ce   :  { %v442_v14 = vpop.f32.mrf.mxu1  ;;  %v598_v15 = vpop.f32.mrf.mxu2 }
 0x1cf   :  { %v491_v27 = vmax.f32 %v442_v14, 0.0  ;;  %v1774_v20 = vadd.f32 %v598_v15, %v1617_v33 }
 0x1d1   :  { %v512_v29 = vpack.c.bf16 %v491_v27, %v490_v16  ;;  %v704_v21 = vpack.c.bf16 %v1774_v20, %v1771_v17 }
 0x1d3   :  { %640 = vmatmul.bf16.gmra.mxu2 %v512_v29  ;;  %797 = vmatmul.bf16.gmra.mxu3 %v704_v21 }
 0x1d6   :  { %v445_v24 = vpop.f32.mrf.mxu1  ;;  %v601_v25 = vpop.f32.mrf.mxu2 }
 0x1d7   :  { %v492_v30 = vmax.f32 %v445_v24, 0.0  ;;  %v1779_v34 = vadd.f32 %v601_v25, %v1621_v35 }
 0x1de   :  { %v447_v26 = vpop.f32.mrf.mxu1  ;;  %v603_v28 = vpop.f32.mrf.mxu2 }
 0x1df   :  { %v493_v31 = vmax.f32 %v447_v26, 0.0  ;;  %v1782_v36 = vadd.f32 %v603_v28, %v1626_v37  ;;  %v1467_v26 = vld [vmem:[%s1985_s3 + $0x78] sm:$0xff] }
 0x1e0   :  { %986 = vmatpush.bf16.msrb.mxu0 %v1467_v26 }
 0x1e1   :  { %v513_v33 = vpack.c.bf16 %v493_v31, %v492_v30  ;;  %v705_v38 = vpack.c.bf16 %v1782_v36, %v1779_v34 }
 0x1e3   :  { %645 = vmatmul.bf16.gmra.mxu2 %v513_v33  ;;  %802 = vmatmul.bf16.gmra.mxu3 %v705_v38  ;;  %v1464_v38 = vld [vmem:[%s1985_s3 + $0x60] sm:$0xff] }
 0x1e6   :  { %v450_v39 = vpop.f32.mrf.mxu1  ;;  %v606_v43 = vpop.f32.mrf.mxu2 }
 0x1e7   :  { %v494_v51 = vmax.f32 %v450_v39, 0.0  ;;  %v1787_v52 = vadd.f32 %v606_v43, %v1633_v40 }
 0x1ee   :  { %v452_v47 = vpop.f32.mrf.mxu1  ;;  %v608_v49 = vpop.f32.mrf.mxu2 }
 0x1ef   :  { %v495_v35 = vmax.f32 %v452_v47, 0.0  ;;  %v1790_v54 = vadd.f32 %v608_v49, %v1635_v41 }
 0x1f1   :  { %v514_v37 = vpack.c.bf16 %v495_v35, %v494_v51  ;;  %v706_v58 = vpack.c.bf16 %v1790_v54, %v1787_v52 }
 0x1f3   :  { %650 = vmatmul.bf16.gmra.mxu2 %v514_v37  ;;  %807 = vmatmul.bf16.gmra.mxu3 %v706_v58  ;;  %v1463_v37 = vld [vmem:[%s1985_s3 + $0x58] sm:$0xff] }
 0x1f6   :  { %v455_v59 = vpop.f32.mrf.mxu1  ;;  %v611_v61 = vpop.f32.mrf.mxu2 }
 0x1f7   :  { %v496_v6 = vmax.f32 %v455_v59, 0.0  ;;  %v1795_v7 = vadd.f32 %v611_v61, %v1642_v44  ;;  %v1460_v61 = vld [vmem:[%s1985_s3 + $0x40] sm:$0xff] }
 0x1fe   :  { %v457_v62 = vpop.f32.mrf.mxu1  ;;  %v613_v4 = vpop.f32.mrf.mxu2 }
 0x1ff   :  { %v497_v40 = vmax.f32 %v457_v62, 0.0  ;;  %v1798_v9 = vadd.f32 %v613_v4, %v1644_v45 }
 0x201   :  { %v515_v41 = vpack.c.bf16 %v497_v40, %v496_v6  ;;  %v707_v10 = vpack.c.bf16 %v1798_v9, %v1795_v7 }
 0x203   :  { %655 = vmatmul.bf16.gmra.mxu2 %v515_v41  ;;  %812 = vmatmul.bf16.gmra.mxu3 %v707_v10 }
 0x206   :  { %v460_v14 = vpop.f32.mrf.mxu1  ;;  %v616_v15 = vpop.f32.mrf.mxu2 }
 0x207   :  { %v498_v29 = vmax.f32 %v460_v14, 0.0  ;;  %v1803_v21 = vadd.f32 %v616_v15, %v1646_v46  ;;  %v1466_v46 = vld [vmem:[%s1985_s3 + $0x70] sm:$0xff] }
 0x208   :  { %987 = vmatpush.bf16.msrb.mxu0 %v1466_v46 }
 0x20e   :  { %v462_v16 = vpop.f32.mrf.mxu1  ;;  %v618_v27 = vpop.f32.mrf.mxu2 }
 0x20f   :  { %v499_v44 = vmax.f32 %v462_v16, 0.0  ;;  %v1806_v24 = vadd.f32 %v618_v27, %v1656_v50  ;;  %v1465_v50 = vld [vmem:[%s1985_s3 + $0x68] sm:$0xff] }
 0x210   :  { %988 = vmatpush.bf16.msrb.mxu0 %v1465_v50 }
 0x211   :  { %v516_v45 = vpack.c.bf16 %v499_v44, %v498_v29  ;;  %v708_v25 = vpack.c.bf16 %v1806_v24, %v1803_v21 }
 0x213   :  { %660 = vmatmul.bf16.gmra.mxu2 %v516_v45  ;;  %817 = vmatmul.bf16.gmra.mxu3 %v708_v25 }
 0x214   :  { %989 = vmatpush.bf16.msrb.mxu0 %v1464_v38 }
 0x216   :  { %v465_v28 = vpop.f32.mrf.mxu1  ;;  %v621_v30 = vpop.f32.mrf.mxu2 }
 0x217   :  { %v500_v39 = vmax.f32 %v465_v28, 0.0  ;;  %v1823_v43 = vadd.f32 %v621_v30, %v1663_v53  ;;  %v1462_v53 = vld [vmem:[%s1985_s3 + $0x50] sm:$0xff] }
 0x218   :  { %990 = vmatpush.bf16.msrb.mxu0 %v1463_v37 }
 0x21c   :  { %991 = vmatpush.bf16.msrb.mxu0 %v1462_v53 }
 0x21e   :  { %v467_v31 = vpop.f32.mrf.mxu1  ;;  %v623_v33 = vpop.f32.mrf.mxu2 }
 0x21f   :  { %v501_v47 = vmax.f32 %v467_v31, 0.0  ;;  %v1826_v49 = vadd.f32 %v623_v33, %v1673_v57  ;;  %v1461_v57 = vld [vmem:[%s1985_s3 + $0x48] sm:$0xff] }
 0x220   :  { %992 = vmatpush.bf16.msrb.mxu0 %v1461_v57 }
 0x221   :  { %v517_v51 = vpack.c.bf16 %v501_v47, %v500_v39  ;;  %v709_v35 = vpack.c.bf16 %v1826_v49, %v1823_v43 }
 0x223   :  { %665 = vmatmul.bf16.gmra.mxu2 %v517_v51  ;;  %822 = vmatmul.bf16.gmra.mxu3 %v709_v35 }
 0x224   :  { %993 = vmatpush.bf16.msrb.mxu0 %v1460_v61 }
 0x226   :  { %v626_v58 = vpop.f32.mrf.mxu2 }
 0x227   :  { %v1843_v62 = vadd.f32 %v626_v58, %v1668_v55 }
 0x22e   :  { %v628_v59 = vpop.f32.mrf.mxu2 }
 0x22f   :  { %v1846_v4 = vadd.f32 %v628_v59, %v1680_v60 }
 0x231   :  { %v710_v6 = vpack.c.bf16 %v1846_v4, %v1843_v62 }
 0x233   :  { %827 = vmatmul.bf16.gmra.mxu3 %v710_v6 }
 0x236   :  { %v631_v40 = vpop.f32.mrf.mxu2 }
 0x237   :  { %v1851_v10 = vadd.f32 %v631_v40, %v1688_v63 }
 0x23e   :  { %v633_v41 = vpop.f32.mrf.mxu2 }
 0x23f   :  { %v1854_v14 = vadd.f32 %v633_v41, %v1692_v1 }
 0x241   :  { %v711_v55 = vpack.c.bf16 %v1854_v14, %v1851_v10 }
 0x243   :  { %832 = vmatmul.bf16.gmra.mxu3 %v711_v55 }
 0x246   :  { %v636_v15 = vpop.f32.mrf.mxu2  ;;  %v793_v60 = vpop.f32.mrf.mxu3 }
 0x247   :  { %v1859_v29 = vadd.f32 %v636_v15, %v1694_v2  ;;  %v873_v44 = vmax.f32 %v793_v60, 0.0 }
 0x24e   :  { %v638_v16 = vpop.f32.mrf.mxu2  ;;  %v795_v27 = vpop.f32.mrf.mxu3 }
 0x24f   :  { %v1862_v45 = vadd.f32 %v638_v16, %v1698_v8  ;;  %v874_v63 = vmax.f32 %v795_v27, 0.0 }
 0x251   :  { %v712_v1 = vpack.c.bf16 %v1862_v45, %v1859_v29  ;;  %v905_v25 = vpack.c.bf16 %v874_v63, %v873_v44 }
 0x253   :  { %837 = vmatmul.bf16.gmra.mxu3 %v712_v1  ;;  %994 = vmatmul.bf16.vlgmr.msrb.gmra.mxu0 %v905_v25 }
 0x256   :  { %v641_v26 = vpop.f32.mrf.mxu2  ;;  %v798_v28 = vpop.f32.mrf.mxu3 }
 0x257   :  { %v1867_v50 = vadd.f32 %v641_v26, %v1702_v12  ;;  %v875_v2 = vmax.f32 %v798_v28, 0.0 }
 0x25e   :  { %v643_v30 = vpop.f32.mrf.mxu2  ;;  %v800_v46 = vpop.f32.mrf.mxu3 }
 0x25f   :  { %v1870_v31 = vadd.f32 %v643_v30, %v1706_v18  ;;  %v876_v8 = vmax.f32 %v800_v46, 0.0 }
 0x261   :  { %v713_v33 = vpack.c.bf16 %v1870_v31, %v1867_v50  ;;  %v906_v38 = vpack.c.bf16 %v876_v8, %v875_v2 }
 0x263   :  { %842 = vmatmul.bf16.gmra.mxu3 %v713_v33  ;;  %999 = vmatmul.bf16.gmra.mxu0 %v906_v38 }
 0x266   :  { %v646_v39 = vpop.f32.mrf.mxu2  ;;  %v803_v47 = vpop.f32.mrf.mxu3 }
 0x267   :  { %v1875_v37 = vadd.f32 %v646_v39, %v1704_v13  ;;  %v877_v12 = vmax.f32 %v803_v47, 0.0 }
 0x26e   :  { %v648_v51 = vpop.f32.mrf.mxu2  ;;  %v805_v35 = vpop.f32.mrf.mxu3 }
 0x26f   :  { %v1878_v58 = vadd.f32 %v648_v51, %v1708_v19  ;;  %v878_v18 = vmax.f32 %v805_v35, 0.0 }
 0x271   :  { %v714_v53 = vpack.c.bf16 %v1878_v58, %v1875_v37  ;;  %v907_v57 = vpack.c.bf16 %v878_v18, %v877_v12 }
 0x273   :  { %847 = vmatmul.bf16.gmra.mxu3 %v714_v53  ;;  %1004 = vmatmul.bf16.gmra.mxu0 %v907_v57 }
 0x276   :  { %v651_v59 = vpop.f32.mrf.mxu2  ;;  %v808_v61 = vpop.f32.mrf.mxu3 }
 0x277   :  { %v1883_v41 = vadd.f32 %v651_v59, %v1712_v23  ;;  %v879_v13 = vmax.f32 %v808_v61, 0.0 }
 0x27e   :  { %v653_v6 = vpop.f32.mrf.mxu2  ;;  %v810_v40 = vpop.f32.mrf.mxu3 }
 0x27f   :  { %v1886_v55 = vadd.f32 %v653_v6, %v1716_v32  ;;  %v880_v19 = vmax.f32 %v810_v40, 0.0 }
 0x281   :  { %v715_v15 = vpack.c.bf16 %v1886_v55, %v1883_v41  ;;  %v908_v60 = vpack.c.bf16 %v880_v19, %v879_v13 }
 0x283   :  { %852 = vmatmul.bf16.gmra.mxu3 %v715_v15  ;;  %1009 = vmatmul.bf16.gmra.mxu0 %v908_v60 }
 0x286   :  { %v656_v16 = vpop.f32.mrf.mxu2  ;;  %v813_v27 = vpop.f32.mrf.mxu3 }
 0x287   :  { %v1891_v1 = vadd.f32 %v656_v16, %v1718_v42  ;;  %v881_v23 = vmax.f32 %v813_v27, 0.0 }
 0x28e   :  { %v658_v44 = vpop.f32.mrf.mxu2  ;;  %v815_v63 = vpop.f32.mrf.mxu3 }
 0x28f   :  { %v1894_v25 = vadd.f32 %v658_v44, %v1722_v48  ;;  %v882_v32 = vmax.f32 %v815_v63, 0.0 }
 0x291   :  { %v716_v26 = vpack.c.bf16 %v1894_v25, %v1891_v1  ;;  %v909_v28 = vpack.c.bf16 %v882_v32, %v881_v23 }
 0x293   :  { %857 = vmatmul.bf16.gmra.mxu3 %v716_v26  ;;  %1014 = vmatmul.bf16.gmra.mxu0 %v909_v28 }
 0x296   :  { %v661_v30 = vpop.f32.mrf.mxu2  ;;  %v818_v46 = vpop.f32.mrf.mxu3 }
 0x297   :  { %v1899_v33 = vadd.f32 %v661_v30, %v1724_v56  ;;  %v883_v42 = vmax.f32 %v818_v46, 0.0 }
 0x29e   :  { %v663_v2 = vpop.f32.mrf.mxu2  ;;  %v820_v8 = vpop.f32.mrf.mxu3 }
 0x29f   :  { %v1902_v38 = vadd.f32 %v663_v2, %v1728_v3  ;;  %v884_v48 = vmax.f32 %v820_v8, 0.0 }
 0x2a1   :  { %v717_v39 = vpack.c.bf16 %v1902_v38, %v1899_v33  ;;  %v910_v47 = vpack.c.bf16 %v884_v48, %v883_v42 }
 0x2a3   :  { %862 = vmatmul.bf16.gmra.mxu3 %v717_v39  ;;  %1019 = vmatmul.bf16.gmra.mxu0 %v910_v47 }
 0x2a6   :  { %v666_v51 = vpop.f32.mrf.mxu2  ;;  %v823_v35 = vpop.f32.mrf.mxu3 }
 0x2a7   :  { %v1907_v53 = vadd.f32 %v666_v51, %v1741_v11  ;;  %v885_v56 = vmax.f32 %v823_v35, 0.0 }
 0x2ae   :  { %v668_v12 = vpop.f32.mrf.mxu2  ;;  %v825_v18 = vpop.f32.mrf.mxu3 }
 0x2af   :  { %v1910_v57 = vadd.f32 %v668_v12, %v1749_v22  ;;  %v886_v3 = vmax.f32 %v825_v18, 0.0 }
 0x2b1   :  { %v718_v59 = vpack.c.bf16 %v1910_v57, %v1907_v53  ;;  %v911_v61 = vpack.c.bf16 %v886_v3, %v885_v56 }
 0x2b3   :  { %867 = vmatmul.bf16.gmra.mxu3 %v718_v59  ;;  %1024 = vmatmul.bf16.gmra.mxu0 %v911_v61 }
 0x2b6   :  { %v828_v6 = vpop.f32.mrf.mxu3 }
 0x2b7   :  { %v887_v13 = vmax.f32 %v828_v6, 0.0 }
 0x2be   :  { %v830_v40 = vpop.f32.mrf.mxu3 }
 0x2bf   :  { %v888_v19 = vmax.f32 %v830_v40, 0.0 }
 0x2c1   :  { %v912_v15 = vpack.c.bf16 %v888_v19, %v887_v13 }
 0x2c3   :  { %1029 = vmatmul.bf16.gmra.mxu0 %v912_v15 }
 0x2c6   :  { %v833_v60 = vpop.f32.mrf.mxu3 }
 0x2c7   :  { %v889_v16 = vmax.f32 %v833_v60, 0.0 }
 0x2ce   :  { %v835_v11 = vpop.f32.mrf.mxu3 }
 0x2cf   :  { %v890_v27 = vmax.f32 %v835_v11, 0.0 }
 0x2d0   :  { %v995_v44 = vpop.f32.mrf.mxu0 }
 0x2d1   :  { %v913_v22 = vpack.c.bf16 %v890_v27, %v889_v16  ;;  %v1915_v32 = vadd.f32 %v995_v44, %v1763_v0 }
 0x2d3   :  { %1034 = vmatmul.bf16.gmra.mxu0 %v913_v22 }
 0x2d6   :  { %v838_v63 = vpop.f32.mrf.mxu3 }
 0x2d7   :  { %v891_v46 = vmax.f32 %v838_v63, 0.0 }
 0x2d8   :  { %v997_v23 = vpop.f32.mrf.mxu0 }
 0x2d9   :  { %v1918_v26 = vadd.f32 %v997_v23, %v1766_v5 }
 0x2db   :  { %v1108_v28 = vpack.c.bf16 %v1918_v26, %v1915_v32 }
 0x2de   :  { %v840_v30 = vpop.f32.mrf.mxu3 }
 0x2df   :  { %v892_v2 = vmax.f32 %v840_v30, 0.0 }
 0x2e0   :  { %v1000_v8 = vpop.f32.mrf.mxu0 }
 0x2e1   :  { %v914_v42 = vpack.c.bf16 %v892_v2, %v891_v46  ;;  %v1923_v47 = vadd.f32 %v1000_v8, %v1771_v17 }
 0x2e3   :  { %1039 = vmatmul.bf16.gmra.mxu0 %v914_v42 }
 0x2e6   :  { %v843_v48 = vpop.f32.mrf.mxu3 }
 0x2e7   :  { %v893_v35 = vmax.f32 %v843_v48, 0.0 }
 0x2e8   :  { %v1002_v39 = vpop.f32.mrf.mxu0 }
 0x2e9   :  { %v1926_v0 = vadd.f32 %v1002_v39, %v1774_v20 }
 0x2eb   :  { %v1109_v5 = vpack.c.bf16 %v1926_v0, %v1923_v47 }
 0x2ee   :  { %v845_v51 = vpop.f32.mrf.mxu3 }
 0x2ef   :  { %v894_v12 = vmax.f32 %v845_v51, 0.0 }
 0x2f0   :  { %v1005_v18 = vpop.f32.mrf.mxu0 }
 0x2f1   :  { %v915_v56 = vpack.c.bf16 %v894_v12, %v893_v35  ;;  %v1931_v61 = vadd.f32 %v1005_v18, %v1779_v34 }
 0x2f3   :  { %1044 = vmatmul.bf16.gmra.mxu0 %v915_v56 }
 0x2f6   :  { %v848_v3 = vpop.f32.mrf.mxu3 }
 0x2f7   :  { %v895_v40 = vmax.f32 %v848_v3, 0.0 }
 0x2f8   :  { %v1007_v59 = vpop.f32.mrf.mxu0 }
 0x2f9   :  { %v1934_v17 = vadd.f32 %v1007_v59, %v1782_v36 }
 0x2fb   :  { %v1110_v20 = vpack.c.bf16 %v1934_v17, %v1931_v61 }
 0x2fe   :  { %v850_v6 = vpop.f32.mrf.mxu3 }
 0x2ff   :  { %v896_v13 = vmax.f32 %v850_v6, 0.0 }
 0x300   :  { %v1010_v19 = vpop.f32.mrf.mxu0 }
 0x301   :  { %v916_v15 = vpack.c.bf16 %v896_v13, %v895_v40  ;;  %v1081_v16 = vadd.f32 %v1010_v19, %v1787_v52 }
 0x303   :  { %1049 = vmatmul.bf16.gmra.mxu0 %v916_v15 }
 0x306   :  { %v853_v60 = vpop.f32.mrf.mxu3 }
 0x307   :  { %v897_v22 = vmax.f32 %v853_v60, 0.0 }
 0x308   :  { %v1012_v11 = vpop.f32.mrf.mxu0 }
 0x309   :  { %v1082_v27 = vadd.f32 %v1012_v11, %v1790_v54 }
 0x30b   :  { %v1111_v34 = vpack.c.bf16 %v1082_v27, %v1081_v16 }
 0x30e   :  { %v855_v44 = vpop.f32.mrf.mxu3 }
 0x30f   :  { %v898_v36 = vmax.f32 %v855_v44, 0.0 }
 0x310   :  { %v1015_v63 = vpop.f32.mrf.mxu0 }
 0x311   :  { %v917_v23 = vpack.c.bf16 %v898_v36, %v897_v22  ;;  %v1083_v2 = vadd.f32 %v1015_v63, %v1795_v7 }
 0x313   :  { %1054 = vmatmul.bf16.gmra.mxu0 %v917_v23 }
 0x316   :  { %v858_v30 = vpop.f32.mrf.mxu3 }
 0x317   :  { %v899_v39 = vmax.f32 %v858_v30, 0.0 }
 0x318   :  { %v1017_v46 = vpop.f32.mrf.mxu0 }
 0x319   :  { %v1084_v8 = vadd.f32 %v1017_v46, %v1798_v9 }
 0x31b   :  { %v1112_v42 = vpack.c.bf16 %v1084_v8, %v1083_v2 }
 0x31e   :  { %v860_v48 = vpop.f32.mrf.mxu3 }
 0x31f   :  { %v900_v51 = vmax.f32 %v860_v48, 0.0 }
 0x320   :  { %v1020_v52 = vpop.f32.mrf.mxu0 }
 0x321   :  { %v918_v35 = vpack.c.bf16 %v900_v51, %v899_v39  ;;  %v1085_v2 = vadd.f32 %v1020_v52, %v1803_v21 }
 0x323   :  { %1059 = vmatmul.bf16.gmra.mxu0 %v918_v35 }
 0x326   :  { %v863_v54 = vpop.f32.mrf.mxu3 }
 0x327   :  { %v901_v56 = vmax.f32 %v863_v54, 0.0 }
 0x328   :  { %v1022_v12 = vpop.f32.mrf.mxu0 }
 0x329   :  { %v1086_v30 = vadd.f32 %v1022_v12, %v1806_v24 }
 0x32b   :  { %v1113_v48 = vpack.c.bf16 %v1086_v30, %v1085_v2 }
 0x32e   :  { %v865_v18 = vpop.f32.mrf.mxu3 }
 0x32f   :  { %v902_v3 = vmax.f32 %v865_v18, 0.0 }
 0x330   :  { %v1025_v59 = vpop.f32.mrf.mxu0 }
 0x331   :  { %v919_v6 = vpack.c.bf16 %v902_v3, %v901_v56  ;;  %v1087_v63 = vadd.f32 %v1025_v59, %v1823_v43 }
 0x333   :  { %1064 = vmatmul.bf16.gmra.mxu0 %v919_v6 }
 0x336   :  { %v868_v40 = vpop.f32.mrf.mxu3 }
 0x337   :  { %v903_v19 = vmax.f32 %v868_v40, 0.0 }
 0x338   :  { %v1027_v13 = vpop.f32.mrf.mxu0 }
 0x339   :  { %v1088_v22 = vadd.f32 %v1027_v13, %v1826_v49 }
 0x33b   :  { %v1114_v23 = vpack.c.bf16 %v1088_v22, %v1087_v63 }
 0x33e   :  { %v870_v7 = vpop.f32.mrf.mxu3 }
 0x33f   :  { %v904_v9 = vmax.f32 %v870_v7, 0.0 }
 0x340   :  { %v1030_v15 = vpop.f32.mrf.mxu0 }
 0x341   :  { %v920_v60 = vpack.c.bf16 %v904_v9, %v903_v19  ;;  %v1089_v16 = vadd.f32 %v1030_v15, %v1843_v62 }
 0x343   :  { %1069 = vmatmul.bf16.gmra.mxu0 %v920_v60 }
 0x348   :  { %v1032_v11 = vpop.f32.mrf.mxu0 }
 0x349   :  { %v1090_v27 = vadd.f32 %v1032_v11, %v1846_v4 }
 0x34b   :  { %v1115_v44 = vpack.c.bf16 %v1090_v27, %v1089_v16 }
 0x34d   :  { %1124 = vmatpush.bf16.xpose.msra.mxu1 %v1115_v44 }
 0x350   :  { %v1035_v36 = vpop.f32.mrf.mxu0 }
 0x351   :  { %v1091_v8 = vadd.f32 %v1035_v36, %v1851_v10 }
 0x355   :  { %1125 = vmatpush.bf16.xpose.msra.mxu1 %v1114_v23 }
 0x358   :  { %v1037_v46 = vpop.f32.mrf.mxu0 }
 0x359   :  { %v1092_v62 = vadd.f32 %v1037_v46, %v1854_v14 }
 0x35b   :  { %v1116_v4 = vpack.c.bf16 %v1092_v62, %v1091_v8 }
 0x35d   :  { %1126 = vmatpush.bf16.xpose.msra.mxu1 %v1113_v48 }
 0x360   :  { %v1040_v39 = vpop.f32.mrf.mxu0 }
 0x361   :  { %v1093_v51 = vadd.f32 %v1040_v39, %v1859_v29 }
 0x365   :  { %1127 = vmatpush.bf16.xpose.msra.mxu1 %v1112_v42 }
 0x368   :  { %v1042_v49 = vpop.f32.mrf.mxu0 }
 0x369   :  { %v1094_v43 = vadd.f32 %v1042_v49, %v1862_v45 }
 0x36b   :  { %v1117_v35 = vpack.c.bf16 %v1094_v43, %v1093_v51 }
 0x36d   :  { %1128 = vmatpush.bf16.xpose.msra.mxu1 %v1111_v34 }
 0x370   :  { %v1045_v24 = vpop.f32.mrf.mxu0 }
 0x371   :  { %v1095_v10 = vadd.f32 %v1045_v24, %v1867_v50 }
 0x375   :  { %1129 = vmatpush.bf16.xpose.msra.mxu1 %v1110_v20 }
 0x378   :  { %v1047_v21 = vpop.f32.mrf.mxu0 }
 0x379   :  { %v1096_v14 = vadd.f32 %v1047_v21, %v1870_v31 }
 0x37b   :  { %v1118_v52 = vpack.c.bf16 %v1096_v14, %v1095_v10 }
 0x37d   :  { %1130 = vmatpush.bf16.xpose.msra.mxu1 %v1109_v5 }
 0x380   :  { %v1050_v29 = vpop.f32.mrf.mxu0 }
 0x381   :  { %v1097_v34 = vadd.f32 %v1050_v29, %v1875_v37 }
 0x385   :  { %1131 = vmatpush.bf16.xpose.msra.mxu1 %v1108_v28 }
 0x388   :  { %v1052_v45 = vpop.f32.mrf.mxu0 }
 0x389   :  { %v1098_v61 = vadd.f32 %v1052_v45, %v1878_v58 }
 0x38b   :  { %v1119_v17 = vpack.c.bf16 %v1098_v61, %v1097_v34 }
 0x390   :  { %v1055_v20 = vpop.f32.mrf.mxu0 }
 0x391   :  { %v1099_v31 = vadd.f32 %v1055_v20, %v1883_v41 }
 0x398   :  { %v1057_v50 = vpop.f32.mrf.mxu0 }
 0x399   :  { %v1100_v42 = vadd.f32 %v1057_v50, %v1886_v55 }
 0x39b   :  { %v1120_v54 = vpack.c.bf16 %v1100_v42, %v1099_v31 }
 0x3a0   :  { %v1060_v47 = vpop.f32.mrf.mxu0 }
 0x3a1   :  { %v1101_v3 = vadd.f32 %v1060_v47, %v1891_v1 }
 0x3a8   :  { %v1062_v0 = vpop.f32.mrf.mxu0 }
 0x3a9   :  { %v1102_v55 = vadd.f32 %v1062_v0, %v1894_v25 }
 0x3ab   :  { %v1121_v59 = vpack.c.bf16 %v1102_v55, %v1101_v3 }
 0x3b0   :  { %v1065_v5 = vpop.f32.mrf.mxu0 }
 0x3b1   :  { %v1103_v56 = vadd.f32 %v1065_v5, %v1899_v33 }
 0x3b8   :  { %v1067_v12 = vpop.f32.mrf.mxu0 }
 0x3b9   :  { %v1104_v58 = vadd.f32 %v1067_v12, %v1902_v38 }
 0x3bb   :  { %v1122_v41 = vpack.c.bf16 %v1104_v58, %v1103_v56 }
 0x3c0   :  { %v1070_v18 = vpop.f32.mrf.mxu0 }
 0x3c1   :  { %v1105_v26 = vadd.f32 %v1070_v18, %v1907_v53  ;;  %v1107_v53 = vld [vmem:[%s1986_s4] sm:$0xf] }
 0x3c2   :  { %1132 = vmatmul.bf16.vlgmr.msra.gmra.mxu1 %v1107_v53 }
 0x3c8   :  { %v1072_v32 = vpop.f32.mrf.mxu0 }
 0x3c9   :  { %v1106_v37 = vadd.f32 %v1072_v32, %v1910_v57 }
 0x3cb   :  { %v1123_v28 = vpack.c.bf16 %v1106_v37, %v1105_v26 }
 0x3cd   :  { %1137 = vmatpush.bf16.xpose.msra.mxu2 %v1123_v28 }
 0x3d5   :  { %1138 = vmatpush.bf16.xpose.msra.mxu2 %v1122_v41 }
 0x3dd   :  { %1139 = vmatpush.bf16.xpose.msra.mxu2 %v1121_v59 }
 0x3e5   :  { %1140 = vmatpush.bf16.xpose.msra.mxu2 %v1120_v54 }
 0x3ed   :  { %1141 = vmatpush.bf16.xpose.msra.mxu2 %v1119_v17 }
 0x3f5   :  { %1142 = vmatpush.bf16.xpose.msra.mxu2 %v1118_v52 }
 0x3fd   :  { %1143 = vmatpush.bf16.xpose.msra.mxu2 %v1117_v35 }
 0x405   :  { %1144 = vmatpush.bf16.xpose.msra.mxu2 %v1116_v4 }
 0x40c   :  { %1145 = vmatmul.bf16.vlgmr.msra.gmra.mxu2 %v1107_v53 }
 0x43f   :  { %v1133_v33 = vpop.f32.mrf.mxu1 }
 0x440   :  { %1150 = vst [vmem:[%s1987_s5] sm:$0xff] %v1133_v33 }
 0x447   :  { %v1135_v25 = vpop.f32.mrf.mxu1 }
 0x48f   :  { %v1146_v1 = vpop.f32.mrf.mxu2 }
 0x490   :  { %1151 = vst [vmem:[%s1987_s5 + $0x8] sm:$0xff] %v1146_v1 }
 0x497   :  { %v1148_v38 = vpop.f32.mrf.mxu2 }

</bundles_post_ra>
